<compile_context>
chip_gen: v5e
topology: v5e:2x2
jax: 0.10.0
libtpu: 0.0.40
codegen_flags: <defaults>
</compile_context>

<pallas_src>
import math

import numpy as np
import jax
import jax.numpy as jnp
from jax.experimental import pallas as pl
from jax.experimental.pallas import tpu as pltpu


def _round_up(x, m):
    return (x + m - 1) // m * m


def _make_multiconv_kernel(layer_dims, shifts, hw):
    """Build the fused multi-conv kernel.

    layer_dims: list of (cin_pad, cout) per layer (static python ints).
    shifts:     per-tap lane-roll amounts (static python ints), length KH*KW.
    hw:         flattened spatial size H*W.
    """
    n_layers = len(layer_dims)
    kk = len(shifts)

    def kernel(x_ref, mask_ref, *rest):
        w_refs = rest[:n_layers]          # each (cout_l, kk * cin_pad_l), VMEM-resident
        o_ref = rest[n_layers]            # (1, cout_last, HW)
        slab_ref = rest[n_layers + 1]     # (max_rows, HW) VMEM scratch (im2col slab)

        # Boundary masks (zero padding) are shared by all layers; load once.
        tap_masks = [mask_ref[pl.ds(t, 1), :] for t in range(kk)]   # each (1, HW)

        act = x_ref[0]                    # (C_in, HW) f32, spatial on lanes
        for li, (cin_pad, cout) in enumerate(layer_dims):
            # Pad channels up to a multiple of 8 so slab writes are sublane-aligned.
            # (The matching weight rows are zero, so padded rows never contribute.)
            if act.shape[0] < cin_pad:
                act = jnp.concatenate(
                    [act, jnp.zeros((cin_pad - act.shape[0], hw), jnp.float32)], axis=0)

            rows = kk * cin_pad
            # Build the im2col slab: rows [tap*cin_pad, (tap+1)*cin_pad) hold the
            # tap-shifted, boundary-masked image. Roll = XLU, mask mul = VPU,
            # aligned full-sublane/lane stores into scratch.
            for tap in range(kk):
                if shifts[tap]:
                    rolled = pltpu.roll(act, shift=shifts[tap], axis=1)
                else:
                    rolled = act
                piece = rolled * tap_masks[tap]
                slab_ref[pl.ds(tap * cin_pad, cin_pad), :] = piece

            # Single MXU matmul per layer: (cout, rows) x (rows, HW) -> (cout, HW).
            w = w_refs[li][...]
            act = jnp.dot(w, slab_ref[pl.ds(0, rows), :],
                          preferred_element_type=jnp.float32)

        o_ref[0] = act                    # lane-dense (cout_last, HW) full store

    return kernel


class MultiConv2dPallas:
    """JAX/Pallas equivalent of MultiConv2d.forward (composition of zero-mean convs)."""

    def __init__(self, channels, kernel_size=3, padding=1, *, key):
        self.channels = list(channels)
        self.kernel_size = kernel_size
        self.padding = padding
        kh = kw = kernel_size

        self.weights_oihw = []      # effective (zero-mean) weights, PyTorch OIHW layout
        self.weights_packed = []    # (cout, KH*KW*cin_pad) packed for the fused kernel
        self.layer_dims = []        # (cin_pad, cout) per layer
        for i in range(len(channels) - 1):
            key, sub = jax.random.split(key)
            cin, cout = channels[i], channels[i + 1]
            fan_in = cin * kernel_size * kernel_size
            bound = 1.0 / math.sqrt(fan_in)   # PyTorch Conv2d default kaiming-uniform bound
            w = jax.random.uniform(sub, (cout, cin, kh, kw),
                                   minval=-bound, maxval=bound, dtype=jnp.float32)
            # ZeroMean parametrization: subtract per-output-channel mean over (cin, kh, kw).
            w = w - jnp.mean(w, axis=(1, 2, 3), keepdims=True)
            self.weights_oihw.append(w)

            cin_pad = _round_up(cin, 8)
            w_t = jnp.transpose(w, (0, 2, 3, 1))                     # (cout, kh, kw, cin)
            w_t = jnp.pad(w_t, ((0, 0), (0, 0), (0, 0), (0, cin_pad - cin)))
            self.weights_packed.append(w_t.reshape(cout, kh * kw * cin_pad))
            self.layer_dims.append((cin_pad, cout))
        # NOTE: initSN() in the PyTorch module does not persist (parametrized `.data`
        # write), so no spectral-norm rescaling is applied to the forward weights.

    def __call__(self, x_nchw):
        x = x_nchw.astype(jnp.float32)
        n, c, h, w = x.shape
        assert c == self.channels[0]
        hw = h * w
        kh = kw = self.kernel_size
        kk = kh * kw
        p = self.padding
        cout_last = self.channels[-1]

        # Per-tap lane-roll amounts + 0/1 boundary masks (these implement zero padding,
        # replacing the per-layer jnp.pad / HBM round-trip of the previous version).
        s = np.arange(hw)
        ys, xs = s // w, s % w
        shifts, mask_rows = [], []
        for dy in range(kh):
            for dx in range(kw):
                off = (dy - p) * w + (dx - p)
                shifts.append((-off) % hw)
                ok = ((ys + dy - p >= 0) & (ys + dy - p < h) &
                      (xs + dx - p >= 0) & (xs + dx - p < w))
                mask_rows.append(ok.astype(np.float32))
        masks = jnp.asarray(np.stack(mask_rows))          # (kk, hw)

        x_flat = x.reshape(n, c, hw)                      # contiguous reshape, no movement

        kernel = _make_multiconv_kernel(self.layer_dims, shifts, hw)
        max_rows = max(kk * cp for cp, _ in self.layer_dims)

        flops = 2 * n * hw * sum(kk * cp * co for cp, co in self.layer_dims)
        bytes_accessed = 4 * (x_flat.size + n * cout_last * hw + masks.size
                              + sum(wp.size for wp in self.weights_packed))

        out = pl.pallas_call(
            kernel,
            out_shape=jax.ShapeDtypeStruct((n, cout_last, hw), jnp.float32),
            grid=(n,),
            in_specs=[pl.BlockSpec((1, c, hw), lambda i: (i, 0, 0)),
                      pl.BlockSpec((kk, hw), lambda i: (0, 0))] +
                     [pl.BlockSpec(wp.shape, lambda i: (0, 0))
                      for wp in self.weights_packed],
            out_specs=pl.BlockSpec((1, cout_last, hw), lambda i: (i, 0, 0)),
            scratch_shapes=[pltpu.VMEM((max_rows, hw), jnp.float32)],
            compiler_params=pltpu.CompilerParams(dimension_semantics=("parallel",)),
            cost_estimate=pl.CostEstimate(flops=flops, transcendentals=0,
                                          bytes_accessed=bytes_accessed),
        )(x_flat, masks, *self.weights_packed)

        return out.reshape(n, cout_last, h, w)            # NCHW out, no transpose needed

    def reference(self, x_nchw):
        """Plain-JAX reference (lax conv) for correctness checking."""
        x = x_nchw.astype(jnp.float32)
        p = self.padding
        for w in self.weights_oihw:
            x = jax.lax.conv_general_dilated(
                x, w, window_strides=(1, 1), padding=[(p, p), (p, p)],
                dimension_numbers=("NCHW", "OIHW", "NCHW"))
        return x


if __name__ == "__main__":
    key = jax.random.PRNGKey(0)
    k_model, k_x = jax.random.split(key)

    channels = [4, 8, 16]          # two conv layers: 4 -> 8 -> 16 channels
    model = MultiConv2dPallas(channels, kernel_size=3, padding=1, key=k_model)

    x = jax.random.normal(k_x, (2, 4, 16, 16), dtype=jnp.float32)   # NCHW, like PyTorch

    y = jax.block_until_ready(model(x))
    assert y.shape == (2, 16, 16, 16), y.shape

    y_ref = model.reference(x)
    max_err = float(jnp.max(jnp.abs(y - y_ref)))
    assert jnp.allclose(y, y_ref, atol=1e-4, rtol=1e-4), max_err

    print("KERNEL_OK")
</pallas_src>

<mosaic_0001>
module attributes {stable_mosaic.version = 11 : i64} {
  func.func @kernel(%arg0: i32, %arg1: memref<1x4x256xf32, #tpu.memory_space<vmem>>, %arg2: memref<9x256xf32, #tpu.memory_space<vmem>>, %arg3: memref<8x72xf32, #tpu.memory_space<vmem>>, %arg4: memref<16x72xf32, #tpu.memory_space<vmem>>, %arg5: memref<1x16x256xf32, #tpu.memory_space<vmem>>, %arg6: memref<72x256xf32, #tpu.memory_space<vmem>>) attributes {dimension_semantics = [#tpu.dimension_semantics<parallel>], iteration_bounds = array<i64: 2>, scalar_prefetch = 0 : i64, scratch_operands = 1 : i64, tpu.core_type = #tpu.core_type<tc>, window_params = [{transform_indices = @transform_0, window_bounds = array<i64: 1, 4, 256>}, {pipeline_mode = #tpu.pipeline_mode<synchronous>, transform_indices = @transform_1, window_bounds = array<i64: 9, 256>}, {pipeline_mode = #tpu.pipeline_mode<synchronous>, transform_indices = @transform_2, window_bounds = array<i64: 8, 72>}, {pipeline_mode = #tpu.pipeline_mode<synchronous>, transform_indices = @transform_3, window_bounds = array<i64: 16, 72>}, {transform_indices = @transform_4, window_bounds = array<i64: 1, 16, 256>}]} {
    %c0 = arith.constant 0 : index
    %c0_0 = arith.constant 0 : index
    %0 = vector.load %arg2[%c0, %c0_0] : memref<9x256xf32, #tpu.memory_space<vmem>>, vector<1x256xf32>
    %c1 = arith.constant 1 : index
    %c0_1 = arith.constant 0 : index
    %1 = vector.load %arg2[%c1, %c0_1] : memref<9x256xf32, #tpu.memory_space<vmem>>, vector<1x256xf32>
    %c2 = arith.constant 2 : index
    %c0_2 = arith.constant 0 : index
    %2 = vector.load %arg2[%c2, %c0_2] : memref<9x256xf32, #tpu.memory_space<vmem>>, vector<1x256xf32>
    %c3 = arith.constant 3 : index
    %c0_3 = arith.constant 0 : index
    %3 = vector.load %arg2[%c3, %c0_3] : memref<9x256xf32, #tpu.memory_space<vmem>>, vector<1x256xf32>
    %c4 = arith.constant 4 : index
    %c0_4 = arith.constant 0 : index
    %4 = vector.load %arg2[%c4, %c0_4] : memref<9x256xf32, #tpu.memory_space<vmem>>, vector<1x256xf32>
    %c5 = arith.constant 5 : index
    %c0_5 = arith.constant 0 : index
    %5 = vector.load %arg2[%c5, %c0_5] : memref<9x256xf32, #tpu.memory_space<vmem>>, vector<1x256xf32>
    %c6 = arith.constant 6 : index
    %c0_6 = arith.constant 0 : index
    %6 = vector.load %arg2[%c6, %c0_6] : memref<9x256xf32, #tpu.memory_space<vmem>>, vector<1x256xf32>
    %c7 = arith.constant 7 : index
    %c0_7 = arith.constant 0 : index
    %7 = vector.load %arg2[%c7, %c0_7] : memref<9x256xf32, #tpu.memory_space<vmem>>, vector<1x256xf32>
    %c8 = arith.constant 8 : index
    %c0_8 = arith.constant 0 : index
    %8 = vector.load %arg2[%c8, %c0_8] : memref<9x256xf32, #tpu.memory_space<vmem>>, vector<1x256xf32>
    %c0_9 = arith.constant 0 : index
    %c0_10 = arith.constant 0 : index
    %c0_11 = arith.constant 0 : index
    %9 = vector.load %arg1[%c0_9, %c0_10, %c0_11] : memref<1x4x256xf32, #tpu.memory_space<vmem>>, vector<1x4x256xf32>
    %10 = vector.shape_cast %9 : vector<1x4x256xf32> to vector<4x256xf32>
    %cst = arith.constant 0.000000e+00 : f32
    %11 = vector.broadcast %cst : f32 to vector<4x256xf32>
    %12 = tpu.concatenate %10, %11 in 0 : vector<4x256xf32>, vector<4x256xf32> -> vector<8x256xf32>
    %c17_i32 = arith.constant 17 : i32
    %13 = tpu.dynamic_rotate %12 by %c17_i32 dim 1 : vector<8x256xf32>, i32 -> vector<8x256xf32>
    %14 = vector.broadcast %0 : vector<1x256xf32> to vector<8x256xf32>
    %15 = arith.mulf %13, %14 : vector<8x256xf32>
    %c0_12 = arith.constant 0 : index
    %c0_13 = arith.constant 0 : index
    %16 = vector.load %arg6[%c0_12, %c0_13] : memref<72x256xf32, #tpu.memory_space<vmem>>, vector<8x256xf32>
    tpu.vector_store %arg6[%c0_12, %c0_13], %15 {strides = array<i32>} : memref<72x256xf32, #tpu.memory_space<vmem>>, vector<8x256xf32>,
    %c16_i32 = arith.constant 16 : i32
    %17 = tpu.dynamic_rotate %12 by %c16_i32 dim 1 : vector<8x256xf32>, i32 -> vector<8x256xf32>
    %18 = vector.broadcast %1 : vector<1x256xf32> to vector<8x256xf32>
    %19 = arith.mulf %17, %18 : vector<8x256xf32>
    %c8_14 = arith.constant 8 : index
    %c0_15 = arith.constant 0 : index
    %20 = vector.load %arg6[%c8_14, %c0_15] : memref<72x256xf32, #tpu.memory_space<vmem>>, vector<8x256xf32>
    tpu.vector_store %arg6[%c8_14, %c0_15], %19 {strides = array<i32>} : memref<72x256xf32, #tpu.memory_space<vmem>>, vector<8x256xf32>,
    %c15_i32 = arith.constant 15 : i32
    %21 = tpu.dynamic_rotate %12 by %c15_i32 dim 1 : vector<8x256xf32>, i32 -> vector<8x256xf32>
    %22 = vector.broadcast %2 : vector<1x256xf32> to vector<8x256xf32>
    %23 = arith.mulf %21, %22 : vector<8x256xf32>
    %c16 = arith.constant 16 : index
    %c0_16 = arith.constant 0 : index
    %24 = vector.load %arg6[%c16, %c0_16] : memref<72x256xf32, #tpu.memory_space<vmem>>, vector<8x256xf32>
    tpu.vector_store %arg6[%c16, %c0_16], %23 {strides = array<i32>} : memref<72x256xf32, #tpu.memory_space<vmem>>, vector<8x256xf32>,
    %c1_i32 = arith.constant 1 : i32
    %25 = tpu.dynamic_rotate %12 by %c1_i32 dim 1 : vector<8x256xf32>, i32 -> vector<8x256xf32>
    %26 = vector.broadcast %3 : vector<1x256xf32> to vector<8x256xf32>
    %27 = arith.mulf %25, %26 : vector<8x256xf32>
    %c24 = arith.constant 24 : index
    %c0_17 = arith.constant 0 : index
    %28 = vector.load %arg6[%c24, %c0_17] : memref<72x256xf32, #tpu.memory_space<vmem>>, vector<8x256xf32>
    tpu.vector_store %arg6[%c24, %c0_17], %27 {strides = array<i32>} : memref<72x256xf32, #tpu.memory_space<vmem>>, vector<8x256xf32>,
    %29 = vector.broadcast %4 : vector<1x256xf32> to vector<8x256xf32>
    %30 = arith.mulf %12, %29 : vector<8x256xf32>
    %c32 = arith.constant 32 : index
    %c0_18 = arith.constant 0 : index
    %31 = vector.load %arg6[%c32, %c0_18] : memref<72x256xf32, #tpu.memory_space<vmem>>, vector<8x256xf32>
    tpu.vector_store %arg6[%c32, %c0_18], %30 {strides = array<i32>} : memref<72x256xf32, #tpu.memory_space<vmem>>, vector<8x256xf32>,
    %c255_i32 = arith.constant 255 : i32
    %32 = tpu.dynamic_rotate %12 by %c255_i32 dim 1 : vector<8x256xf32>, i32 -> vector<8x256xf32>
    %33 = vector.broadcast %5 : vector<1x256xf32> to vector<8x256xf32>
    %34 = arith.mulf %32, %33 : vector<8x256xf32>
    %c40 = arith.constant 40 : index
    %c0_19 = arith.constant 0 : index
    %35 = vector.load %arg6[%c40, %c0_19] : memref<72x256xf32, #tpu.memory_space<vmem>>, vector<8x256xf32>
    tpu.vector_store %arg6[%c40, %c0_19], %34 {strides = array<i32>} : memref<72x256xf32, #tpu.memory_space<vmem>>, vector<8x256xf32>,
    %c241_i32 = arith.constant 241 : i32
    %36 = tpu.dynamic_rotate %12 by %c241_i32 dim 1 : vector<8x256xf32>, i32 -> vector<8x256xf32>
    %37 = vector.broadcast %6 : vector<1x256xf32> to vector<8x256xf32>
    %38 = arith.mulf %36, %37 : vector<8x256xf32>
    %c48 = arith.constant 48 : index
    %c0_20 = arith.constant 0 : index
    %39 = vector.load %arg6[%c48, %c0_20] : memref<72x256xf32, #tpu.memory_space<vmem>>, vector<8x256xf32>
    tpu.vector_store %arg6[%c48, %c0_20], %38 {strides = array<i32>} : memref<72x256xf32, #tpu.memory_space<vmem>>, vector<8x256xf32>,
    %c240_i32 = arith.constant 240 : i32
    %40 = tpu.dynamic_rotate %12 by %c240_i32 dim 1 : vector<8x256xf32>, i32 -> vector<8x256xf32>
    %41 = vector.broadcast %7 : vector<1x256xf32> to vector<8x256xf32>
    %42 = arith.mulf %40, %41 : vector<8x256xf32>
    %c56 = arith.constant 56 : index
    %c0_21 = arith.constant 0 : index
    %43 = vector.load %arg6[%c56, %c0_21] : memref<72x256xf32, #tpu.memory_space<vmem>>, vector<8x256xf32>
    tpu.vector_store %arg6[%c56, %c0_21], %42 {strides = array<i32>} : memref<72x256xf32, #tpu.memory_space<vmem>>, vector<8x256xf32>,
    %c239_i32 = arith.constant 239 : i32
    %44 = tpu.dynamic_rotate %12 by %c239_i32 dim 1 : vector<8x256xf32>, i32 -> vector<8x256xf32>
    %45 = vector.broadcast %8 : vector<1x256xf32> to vector<8x256xf32>
    %46 = arith.mulf %44, %45 : vector<8x256xf32>
    %c64 = arith.constant 64 : index
    %c0_22 = arith.constant 0 : index
    %47 = vector.load %arg6[%c64, %c0_22] : memref<72x256xf32, #tpu.memory_space<vmem>>, vector<8x256xf32>
    tpu.vector_store %arg6[%c64, %c0_22], %46 {strides = array<i32>} : memref<72x256xf32, #tpu.memory_space<vmem>>, vector<8x256xf32>,
    %c0_23 = arith.constant 0 : index
    %c0_24 = arith.constant 0 : index
    %48 = vector.load %arg3[%c0_23, %c0_24] : memref<8x72xf32, #tpu.memory_space<vmem>>, vector<8x72xf32>
    %c0_25 = arith.constant 0 : index
    %c0_26 = arith.constant 0 : index
    %49 = vector.load %arg6[%c0_25, %c0_26] : memref<72x256xf32, #tpu.memory_space<vmem>>, vector<72x256xf32>
    %cst_27 = arith.constant dense<0.000000e+00> : vector<8x256xf32>
    %50 = tpu.matmul %48, %49, %cst_27 {dimension_numbers = #tpu.dot_dimension_numbers<[1], [0], [0], [1], [0, 0, 1, 1], [], []>} : vector<8x72xf32>, vector<72x256xf32>, vector<8x256xf32> -> vector<8x256xf32>
    %c17_i32_28 = arith.constant 17 : i32
    %51 = tpu.dynamic_rotate %50 by %c17_i32_28 dim 1 : vector<8x256xf32>, i32 -> vector<8x256xf32>
    %52 = vector.broadcast %0 : vector<1x256xf32> to vector<8x256xf32>
    %53 = arith.mulf %51, %52 : vector<8x256xf32>
    %c0_29 = arith.constant 0 : index
    %c0_30 = arith.constant 0 : index
    %54 = vector.load %arg6[%c0_29, %c0_30] : memref<72x256xf32, #tpu.memory_space<vmem>>, vector<8x256xf32>
    tpu.vector_store %arg6[%c0_29, %c0_30], %53 {strides = array<i32>} : memref<72x256xf32, #tpu.memory_space<vmem>>, vector<8x256xf32>,
    %c16_i32_31 = arith.constant 16 : i32
    %55 = tpu.dynamic_rotate %50 by %c16_i32_31 dim 1 : vector<8x256xf32>, i32 -> vector<8x256xf32>
    %56 = vector.broadcast %1 : vector<1x256xf32> to vector<8x256xf32>
    %57 = arith.mulf %55, %56 : vector<8x256xf32>
    %c8_32 = arith.constant 8 : index
    %c0_33 = arith.constant 0 : index
    %58 = vector.load %arg6[%c8_32, %c0_33] : memref<72x256xf32, #tpu.memory_space<vmem>>, vector<8x256xf32>
    tpu.vector_store %arg6[%c8_32, %c0_33], %57 {strides = array<i32>} : memref<72x256xf32, #tpu.memory_space<vmem>>, vector<8x256xf32>,
    %c15_i32_34 = arith.constant 15 : i32
    %59 = tpu.dynamic_rotate %50 by %c15_i32_34 dim 1 : vector<8x256xf32>, i32 -> vector<8x256xf32>
    %60 = vector.broadcast %2 : vector<1x256xf32> to vector<8x256xf32>
    %61 = arith.mulf %59, %60 : vector<8x256xf32>
    %c16_35 = arith.constant 16 : index
    %c0_36 = arith.constant 0 : index
    %62 = vector.load %arg6[%c16_35, %c0_36] : memref<72x256xf32, #tpu.memory_space<vmem>>, vector<8x256xf32>
    tpu.vector_store %arg6[%c16_35, %c0_36], %61 {strides = array<i32>} : memref<72x256xf32, #tpu.memory_space<vmem>>, vector<8x256xf32>,
    %c1_i32_37 = arith.constant 1 : i32
    %63 = tpu.dynamic_rotate %50 by %c1_i32_37 dim 1 : vector<8x256xf32>, i32 -> vector<8x256xf32>
    %64 = vector.broadcast %3 : vector<1x256xf32> to vector<8x256xf32>
    %65 = arith.mulf %63, %64 : vector<8x256xf32>
    %c24_38 = arith.constant 24 : index
    %c0_39 = arith.constant 0 : index
    %66 = vector.load %arg6[%c24_38, %c0_39] : memref<72x256xf32, #tpu.memory_space<vmem>>, vector<8x256xf32>
    tpu.vector_store %arg6[%c24_38, %c0_39], %65 {strides = array<i32>} : memref<72x256xf32, #tpu.memory_space<vmem>>, vector<8x256xf32>,
    %67 = vector.broadcast %4 : vector<1x256xf32> to vector<8x256xf32>
    %68 = arith.mulf %50, %67 : vector<8x256xf32>
    %c32_40 = arith.constant 32 : index
    %c0_41 = arith.constant 0 : index
    %69 = vector.load %arg6[%c32_40, %c0_41] : memref<72x256xf32, #tpu.memory_space<vmem>>, vector<8x256xf32>
    tpu.vector_store %arg6[%c32_40, %c0_41], %68 {strides = array<i32>} : memref<72x256xf32, #tpu.memory_space<vmem>>, vector<8x256xf32>,
    %c255_i32_42 = arith.constant 255 : i32
    %70 = tpu.dynamic_rotate %50 by %c255_i32_42 dim 1 : vector<8x256xf32>, i32 -> vector<8x256xf32>
    %71 = vector.broadcast %5 : vector<1x256xf32> to vector<8x256xf32>
    %72 = arith.mulf %70, %71 : vector<8x256xf32>
    %c40_43 = arith.constant 40 : index
    %c0_44 = arith.constant 0 : index
    %73 = vector.load %arg6[%c40_43, %c0_44] : memref<72x256xf32, #tpu.memory_space<vmem>>, vector<8x256xf32>
    tpu.vector_store %arg6[%c40_43, %c0_44], %72 {strides = array<i32>} : memref<72x256xf32, #tpu.memory_space<vmem>>, vector<8x256xf32>,
    %c241_i32_45 = arith.constant 241 : i32
    %74 = tpu.dynamic_rotate %50 by %c241_i32_45 dim 1 : vector<8x256xf32>, i32 -> vector<8x256xf32>
    %75 = vector.broadcast %6 : vector<1x256xf32> to vector<8x256xf32>
    %76 = arith.mulf %74, %75 : vector<8x256xf32>
    %c48_46 = arith.constant 48 : index
    %c0_47 = arith.constant 0 : index
    %77 = vector.load %arg6[%c48_46, %c0_47] : memref<72x256xf32, #tpu.memory_space<vmem>>, vector<8x256xf32>
    tpu.vector_store %arg6[%c48_46, %c0_47], %76 {strides = array<i32>} : memref<72x256xf32, #tpu.memory_space<vmem>>, vector<8x256xf32>,
    %c240_i32_48 = arith.constant 240 : i32
    %78 = tpu.dynamic_rotate %50 by %c240_i32_48 dim 1 : vector<8x256xf32>, i32 -> vector<8x256xf32>
    %79 = vector.broadcast %7 : vector<1x256xf32> to vector<8x256xf32>
    %80 = arith.mulf %78, %79 : vector<8x256xf32>
    %c56_49 = arith.constant 56 : index
    %c0_50 = arith.constant 0 : index
    %81 = vector.load %arg6[%c56_49, %c0_50] : memref<72x256xf32, #tpu.memory_space<vmem>>, vector<8x256xf32>
    tpu.vector_store %arg6[%c56_49, %c0_50], %80 {strides = array<i32>} : memref<72x256xf32, #tpu.memory_space<vmem>>, vector<8x256xf32>,
    %c239_i32_51 = arith.constant 239 : i32
    %82 = tpu.dynamic_rotate %50 by %c239_i32_51 dim 1 : vector<8x256xf32>, i32 -> vector<8x256xf32>
    %83 = vector.broadcast %8 : vector<1x256xf32> to vector<8x256xf32>
    %84 = arith.mulf %82, %83 : vector<8x256xf32>
    %c64_52 = arith.constant 64 : index
    %c0_53 = arith.constant 0 : index
    %85 = vector.load %arg6[%c64_52, %c0_53] : memref<72x256xf32, #tpu.memory_space<vmem>>, vector<8x256xf32>
    tpu.vector_store %arg6[%c64_52, %c0_53], %84 {strides = array<i32>} : memref<72x256xf32, #tpu.memory_space<vmem>>, vector<8x256xf32>,
    %c0_54 = arith.constant 0 : index
    %c0_55 = arith.constant 0 : index
    %86 = vector.load %arg4[%c0_54, %c0_55] : memref<16x72xf32, #tpu.memory_space<vmem>>, vector<16x72xf32>
    %c0_56 = arith.constant 0 : index
    %c0_57 = arith.constant 0 : index
    %87 = vector.load %arg6[%c0_56, %c0_57] : memref<72x256xf32, #tpu.memory_space<vmem>>, vector<72x256xf32>
    %cst_58 = arith.constant dense<0.000000e+00> : vector<16x256xf32>
    %88 = tpu.matmul %86, %87, %cst_58 {dimension_numbers = #tpu.dot_dimension_numbers<[1], [0], [0], [1], [0, 0, 1, 1], [], []>} : vector<16x72xf32>, vector<72x256xf32>, vector<16x256xf32> -> vector<16x256xf32>
    %c0_59 = arith.constant 0 : index
    %c0_60 = arith.constant 0 : index
    %c0_61 = arith.constant 0 : index
    %89 = vector.load %arg5[%c0_59, %c0_60, %c0_61] : memref<1x16x256xf32, #tpu.memory_space<vmem>>, vector<1x16x256xf32>
    %90 = vector.shape_cast %89 : vector<1x16x256xf32> to vector<16x256xf32>
    %91 = vector.shape_cast %88 : vector<16x256xf32> to vector<1x16x256xf32>
    tpu.vector_store %arg5[%c0_59, %c0_60, %c0_61], %91 {strides = array<i32>} : memref<1x16x256xf32, #tpu.memory_space<vmem>>, vector<1x16x256xf32>,
    return
  }
  func.func @transform_0(%arg0: i32) -> (i32, i32, i32) {
    %c0_i32 = arith.constant 0 : i32
    %c0_i32_0 = arith.constant 0 : i32
    %c0_i32_1 = arith.constant 0 : i32
    return %arg0, %c0_i32, %c0_i32_0 : i32, i32, i32
  }
  func.func @transform_1(%arg0: i32) -> (i32, i32) {
    %c0_i32 = arith.constant 0 : i32
    %c0_i32_0 = arith.constant 0 : i32
    %c0_i32_1 = arith.constant 0 : i32
    return %c0_i32, %c0_i32_0 : i32, i32
  }
  func.func @transform_2(%arg0: i32) -> (i32, i32) {
    %c0_i32 = arith.constant 0 : i32
    %c0_i32_0 = arith.constant 0 : i32
    %c0_i32_1 = arith.constant 0 : i32
    return %c0_i32, %c0_i32_0 : i32, i32
  }
  func.func @transform_3(%arg0: i32) -> (i32, i32) {
    %c0_i32 = arith.constant 0 : i32
    %c0_i32_0 = arith.constant 0 : i32
    %c0_i32_1 = arith.constant 0 : i32
    return %c0_i32, %c0_i32_0 : i32, i32
  }
  func.func @transform_4(%arg0: i32) -> (i32, i32, i32) {
    %c0_i32 = arith.constant 0 : i32
    %c0_i32_0 = arith.constant 0 : i32
    %c0_i32_1 = arith.constant 0 : i32
    return %arg0, %c0_i32, %c0_i32_0 : i32, i32, i32
  }
}

</mosaic_0001>

<bundles_post_ra>
// kernel: tpu_custom_call.1
= control target key start
LH: loop header
LB: loop body
LE: loop exit
PB: predicated region body
PF: predicated region fallthrough
CT: control target
= control target key end

     0   :  { %9 = vsyncpa [#allocation4], 0  ;;  %s1526_s0 = inlined_call_operand.hbm [shape: f32[2,4,256], index: 0, kind: input, shape index: {}]   ;;  %s1527_s1 = inlined_call_operand.hbm [shape: f32[9,256], index: 1, kind: input, shape index: {}]   ;;  %s1528_s2 = inlined_call_operand.hbm [shape: f32[8,72], index: 2, kind: input, shape index: {}]   ;;  %s1529_s3 = inlined_call_operand.hbm [shape: f32[16,72], index: 3, kind: input, shape index: {}]   ;;  %s1530_s4 = inlined_call_operand.hbm [shape: f32[2,16,256], index: 4, kind: output, shape index: {}]  }
   0x1   :  { %11 = vsyncpa [#allocation4 + $0x1], 0 }
   0x2   :  { %12 = vsyncpa [#allocation7], 0 }
   0x3   :  { %13 = vsyncpa [#allocation10], 0 }
   0x4   :  { %14 = vsyncpa [#allocation5], 0 }
   0x5   :  { %16 = vsyncpa [#allocation5 + $0x1], 0  ;;  %s1126_s15 = smov 0   ;;  %s1128_s16 = smov 0  }
   0x6   :  { %s1130_s17 = smov 0   ;;  %s1132_s18 = smov 0  }
   0x7 LB: > { %s153_s21 = sshll.u32 %s1527_s1, 4  ;;  %s1150_s22 = sadd.s32 4294967295, %s1083_s18   ;;  %s1083_s18 = sphi %s1132_s18, %s1541_s18   ;;  %s1079_s17 = sphi %s1130_s17, %s1540_s17   ;;  %s1075_s16 = sphi %s1128_s16, %s1539_s16   ;;  %s1071_s15 = sphi %s1126_s15, %s1538_s15   ;;  %s154_s21 = int_to_ptr.hbm [resolvable:$true] %s153_s21 }
   0x8   : > { %p772_p0 = scmp.ge.s32.totalorder %s1083_s18, 1  ;;  %p43_p1 = scmp.eq.s32.totalorder %s1150_s22, 0 }
   0x9   : > { %p142_p2 = scmp.lt.s32.totalorder %s1083_s18, 3  ;;  %s1085_s24 = smov [#allocation6]  }
   0xa   : > { %s155_s25 = sshll.u32 %s1085_s24, 4  ;;  %s168_s28 = sshll.u32 %s1528_s2, 4  ;;  %s156_s25 = int_to_ptr.vmem [resolvable:$true] %s155_s25  ;;  %s169_s28 = int_to_ptr.hbm [resolvable:$true] %s168_s28 }
   0xb   : > { %p1155_p3 = pnand %p772_p0, %p142_p2  ;;  %s179_s6 = sshll.u32 %s1529_s3, 4  ;;  %s180_s6 = int_to_ptr.hbm [resolvable:$true] %s179_s6 }
   0xc   : > { %s1086_s7 = smov [#allocation8]   ;;  %s1087_s9 = smov 256  }
   0xd   : > { %p815_p4 = pneg %p1155_p3  ;;  %s170_s8 = sshll.u32 %s1086_s7, 4  ;;  %s171_s8 = int_to_ptr.vmem [resolvable:$true] %s170_s8 }
   0xe   : > { %s1088_s10 = smov 16   ;;  %s1089_s11 = smov [#allocation9]  }
   0xf   : > { %p1167_p6 = pnand %p815_p4, %p43_p1  ;;  %s181_s12 = sshll.u32 %s1089_s11, 4  ;;  %s182_s12 = int_to_ptr.vmem [resolvable:$true] %s181_s12 }
  0x10   : > { %s1090_s13 = smov 128   ;;  %s1091_s14 = smov 8  }
  0x11   : > { %818 = dma.hbm_to_vmem [thread:$0]  (!%p1167_p6), %s154_s21, 512, %s156_s25, [#allocation7], %s1087_s9, %s1087_s9, %s1088_s10  }
  0x12   : > { %821 = dma.hbm_to_vmem [thread:$0]  (!%p1167_p6), %s169_s28, 128, %s171_s8, [#allocation7]  }
  0x13   : > { %824 = dma.hbm_to_vmem [thread:$0]  (!%p1167_p6), %s180_s6, 256, %s182_s12, [#allocation10], %s1090_s13, %s1090_s13, %s1091_s14  }
  0x14   : > { %s771_s19 = sadd.s32 4294967294, %s1083_s18   ;;  %s1182_s20 = sadd.s32 1, %s1083_s18  }
  0x15   : > { %s29_s21 = sadd.s32 1, %s1079_s17  ;;  %s26_s24 = ssub.s32 %s1083_s18, %s1182_s20 }
  0x16   : > { %p36_p7 = scmp.ne.s32.totalorder %s1079_s17, %s1075_s16  ;;  %p27_p8 = scmp.eq.s32.totalorder %s26_s24, 0 }
  0x17   : > { %p37_p9 = scmp.eq.s32.totalorder %s1083_s18, 0  ;;  %p42_p10 = scmp.ne.s32.totalorder %s1075_s16, %s1071_s15 }
  0x18   : > { %p129_p11 = scmp.eq.s32.totalorder %s1150_s22, 1  ;;  %p135_p0 = scmp.eq.s32.totalorder %s771_s19, 1 }
  0x19   : > { %s1194_s25 = scalar_select %p27_p8, %s1079_s17, %s29_s21  }
  0x1a   : > { %p1198_p12 = por %p43_p1, %p42_p10  ;;  %p1202_p13 = por %p129_p11, %p36_p7 }
  0x1b   : > { %p38_p2 = por %p37_p9, %p36_p7  ;;  %s195_s28 = sand.u32 1, %s1079_s17  }
  0x1c   : > { %p1207_p4 = por %p135_p0, %p42_p10  ;;  %p836_p6 = scmp.lt.s32.totalorder %s1083_s18, 2 }
  0x1d   : > { %s777_s30 = sshll.u32 %s195_s28, 3  ;;  %s797_s5 = sshll.u32 %s1083_s18, 3 }
  0x1e   : > { %s204_s8 = scalar_lea.hbm %s1526_s0, %s797_s5  ;;  %s199_s10 = scalar_lea.vmem [#allocation3], %s777_s30 }
  0x1f   : > { %s206_s9 = sshll.u32 %s204_s8, 4  ;;  %s208_s11 = sshll.u32 %s199_s10, 4  ;;  %s207_s9 = int_to_ptr.hbm [resolvable:$true] %s206_s9  ;;  %s209_s11 = int_to_ptr.vmem [resolvable:$true] %s208_s11 }
  0x20   : > { %p1216_p8 = pnand %p836_p6, %p38_p2  ;;  %s196_s13 = scalar_lea.sflag [#allocation4], %s195_s28 }
  0x21   : > { %s979_s14 = sshra.s32 %s207_s9, 4  ;;  %s986_s30 = scalar_lea.hbm %s1526_s0, 16  ;;  %s980_s14 = int_to_ptr.hbm [resolvable:$true] %s979_s14 }
  0x22   : > { %s981_s19 = scalar_lea.hbm %s980_s14, 8  ;;  %p983_p9 = pneg %p1216_p8 }
  0x23   : > { %p982_p7 = scmp.ne.s32.totalorder %s980_s14, %s981_s19  ;;  %p987_p0 = scmp.lt.s32.totalorder %s980_s14, %s1526_s0 }
  0x24   : > { %p988_p2 = scmp.lt.s32.totalorder %s986_s30, %s981_s19 }
  0x25   : > { %p984_p10 = pnand %p983_p9, %p982_p7 }
  0x26   : > { %p989_p6 = por %p988_p2, %p987_p0 }
  0x27   : > { %p985_p11 = pneg %p984_p10 }
  0x29   : > { %p990_p5 = pnand %p989_p6, %p985_p11 }
  0x2b   : > { %993 = shalt.err (!%p990_p5)
}
  0x2c   : > { %828 = dma.hbm_to_vmem [thread:$0]  (!%p1216_p8), %s207_s9, 128, %s209_s11, %s196_s13  }
  0x2d   : > { %217 = sbr.rel (%p1155_p3) target bundleno = 655 (0x28f), region = 36  ;;  %s1233_s28 = sand.u32 (!%p1155_p3), 1, %s1075_s16  }
  0x2e   : > { %s781_s7 = sshll.u32 (!%p1155_p3), %s1233_s28, 3  ;;  %s220_s8 = scalar_lea.sflag (!%p1155_p3), [#allocation4], %s1233_s28 }
  0x2f   : > { %s223_s10 = scalar_lea.vmem (!%p1155_p3), [#allocation3], %s781_s7 }
  0x32   : > { %1054 = dma.done.wait (%p1198_p12), %s220_s8, 128  }
  0x33   : > { %1056 = vsyncadd (%p1198_p12), %s220_s8, 4294967168 }
  0x34   : > { %1058 = dma.done.wait (%p43_p1), [#allocation7], 640  }
  0x35   : > { %1060 = vsyncadd (%p43_p1), [#allocation7], 4294966656 }
  0x36   : > { %1062 = dma.done.wait (%p43_p1), [#allocation10], 256  }
  0x37   : > { %1064 = vsyncadd (%p43_p1), [#allocation10], 4294967040  ;;  %v281_v0 = vld [vmem:[%s223_s10] sm:$0xff]  ;;  %vm288_vm0 = vcmask 1043456   ;;  %s1092_s23 = smov 112   ;;  %s1093_s26 = smov 111   ;;  %v295_v6 = vlaneseq }
  0x38   : > { %283 = vst [vmem:[#allocation1] ss:$2 sm:$0xff] %v281_v0  ;;  %s1094_s9 = smov 113   ;;  %s1095_s11 = smov 127   ;;  %vm449_vm9 = vcmask 588800  }
  0x39   : > { %s1096_s12 = smov 1   ;;  %s1097_s13 = smov 15   ;;  %v1285_v9 = vand.u32 127, %v295_v6  ;;  %v1287_v10 = vld [vmem:[#allocation6 + $0x10] ss:$8 sm:$0x3] }
  0x3a   : > { %s1098_s14 = smov 16   ;;  %s1099_s19 = smov 17   ;;  %v1289_v12 = vld [vmem:[#allocation6 + $0x7] ss:$8 sm:$0x3]  ;;  %v422_v13 = vperm.slane %v1287_v10, 0 }
  0x3b   : > { %vm402_vm1 = vcmp.lt.s32.totalorder %v1285_v9, 112  ;;  %vm418_vm2 = vcmp.lt.s32.totalorder %v1285_v9, 111  ;;  %v423_v14 = vperm.slane %v1287_v10, 1  ;;  %v1295_v15 = vld [vmem:[#allocation6 + $0x6] ss:$8 sm:$0x3] }
  0x3c   : > { %vm386_vm3 = vcmp.lt.s32.totalorder %v1285_v9, 113  ;;  %v406_v18 = vperm.slane %v1289_v12, 0  ;;  %v407_v19 = vperm.slane %v1289_v12, 1  ;;  %v390_v26 = vperm.slane %v1295_v15, 0  ;;  %s785_s21 = sshll.u32 %s1233_s28, 5  ;;  %s798_s24 = sshll.u32 %s1150_s22, 5 }
  0x3d   : > { %v391_v27 = vperm.slane %v1295_v15, 1  ;;  %v1314_v28 = vld [vmem:[#allocation6 + $0x5] ss:$8 sm:$0x3]  ;;  %vm370_vm4 = vcmp.lt.s32.totalorder %v1285_v9, 127  ;;  %vm345_vm5 = vcmp.lt.s32.totalorder %v1285_v9, 1  ;;  %s665_s7 = scalar_lea.hbm %s1530_s4, %s798_s24 }
  0x3e   : > { %v1320_v31 = vld [vmem:[#allocation6 + $0x4] ss:$8 sm:$0x3]  ;;  %v374_v35 = vperm.slane %v1314_v28, 0  ;;  %v375_v36 = vperm.slane %v1314_v28, 1  ;;  %vm329_vm6 = vcmp.lt.s32.totalorder %v1285_v9, 15 }
  0x3f   : > { %v284_v1 = vld.sshfl [vmem:[#allocation1] sm:$0xff pattern:$0x75316420]  ;;  %v285_v3 = vld.sshfl [vmem:[#allocation1 + $0x8] sm:$0xff pattern:$0x75316420] }
  0x40   : > { %v1249_v2 = vsel %vm288_vm0, %v284_v1, 0.0  ;;  %v1257_v4 = vsel %vm288_vm0, %v285_v3, 0.0  ;;  %v358_v39 = vperm.slane %v1320_v31, 0  ;;  %v359_v40 = vperm.slane %v1320_v31, 1  ;;  %s263_s30 = scalar_lea.vmem [#allocation11], %s785_s21  ;;  %s668_s10 = sshll.u32 %s665_s7, 4  ;;  %s669_s10 = int_to_ptr.hbm [resolvable:$true] %s668_s10 }
  0x41   : > { %398 = vrot.lane.b32.xlu1 %v1249_v2, %s1092_s23  ;;  %414 = vrot.lane.b32.xlu0 %v1249_v2, %s1093_s26  ;;  %v1349_v49 = vld [vmem:[#allocation6 + $0x3] ss:$8 sm:$0x3]  ;;  %v1351_v50 = vld [vmem:[#allocation6 + $0x2] ss:$8 sm:$0x3] }
  0x42   : > { %382 = vrot.lane.b32.xlu2 %v1249_v2, %s1094_s9  ;;  %v362_v47 = vmul.f32 %v358_v39, %v1249_v2  ;;  %v363_v48 = vmul.f32 %v359_v40, %v1257_v4  ;;  %v349_v51 = vperm.slane %v1349_v49, 0  ;;  %v350_v52 = vperm.slane %v1349_v49, 1  ;;  %s666_s8 = sshll.u32 %s263_s30, 4  ;;  %s1023_s22 = sshra.s32 %s669_s10, 4  ;;  %s667_s8 = int_to_ptr.vmem [resolvable:$true] %s666_s8  ;;  %s1024_s22 = int_to_ptr.hbm [resolvable:$true] %s1023_s22 }
  0x43   : > { %v333_v54 = vperm.slane %v1351_v50, 0  ;;  %v334_v55 = vperm.slane %v1351_v50, 1  ;;  %vm313_vm7 = vcmp.lt.s32.totalorder %v1285_v9, 16  ;;  %vm297_vm8 = vcmp.lt.s32.totalorder %v1285_v9, 17  ;;  %p1030_p12 = scmp.lt.s32.totalorder %s1024_s22, %s1530_s4 }
  0x49   : > { %400 = vrot.lane.b32.xlu1 %v1257_v4, %s1092_s23  ;;  %416 = vrot.lane.b32.xlu0 %v1257_v4, %s1093_s26 }
  0x4a   : > { %384 = vrot.lane.b32.xlu2 %v1257_v4, %s1094_s9 }
  0x51   : > { %368 = vrot.lane.b32.xlu1 %v1257_v4, %s1095_s11  ;;  %366 = vrot.lane.b32.xlu0 %v1249_v2, %s1095_s11 }
  0x52   : > { %341 = vrot.lane.b32.xlu2 %v1249_v2, %s1096_s12 }
  0x59   : > { %325 = vrot.lane.b32.xlu1 %v1249_v2, %s1097_s13  ;;  %343 = vrot.lane.b32.xlu0 %v1257_v4, %s1096_s12 }
  0x5a   : > { %327 = vrot.lane.b32.xlu2 %v1257_v4, %s1097_s13 }
  0x61   : > { %311 = vrot.lane.b32.xlu1 %v1257_v4, %s1098_s14  ;;  %309 = vrot.lane.b32.xlu0 %v1249_v2, %s1098_s14 }
  0x62   : > { %291 = vrot.lane.b32.xlu2 %v1249_v2, %s1099_s19  ;;  %v1375_v2 = vld [vmem:[#allocation6 + $0x1] ss:$8 sm:$0x3] }
  0x63   : > { %v317_v3 = vperm.slane %v1375_v2, 0 }
  0x69   : > { %293 = vrot.lane.b32.xlu0 %v1257_v4, %s1099_s19  ;;  %v318_v4 = vperm.slane %v1375_v2, 1  ;;  %v577_v2 = vld [vmem:[#allocation9] sm:$0xff] }
  0x9c   : > { %v383_v5 = vpop.permute.xlu2 %382 }
  0xa4   : > { %v385_v11 = vpop.permute.xlu2 %384 }
  0xa5   : > { %v387_v29 = vsel %vm386_vm3, %v383_v5, %v385_v11  ;;  %v388_v30 = vsel %vm386_vm3, %v385_v11, %v383_v5 }
  0xa6   : > { %v394_v37 = vmul.f32 %v390_v26, %v387_v29  ;;  %v395_v38 = vmul.f32 %v391_v27, %v388_v30 }
  0xac   : > { %v342_v34 = vpop.permute.xlu2 %341 }
  0xb3   : > { %v399_v7 = vpop.permute.xlu1 %398  ;;  %v415_v8 = vpop.permute.xlu0 %414 }
  0xb4   : > { %v328_v53 = vpop.permute.xlu2 %327 }
  0xbb   : > { %v401_v16 = vpop.permute.xlu1 %400  ;;  %v417_v17 = vpop.permute.xlu0 %416 }
  0xbc   : > { %v403_v20 = vsel %vm402_vm1, %v399_v7, %v401_v16  ;;  %v404_v21 = vsel %vm402_vm1, %v401_v16, %v399_v7  ;;  %v419_v22 = vsel %vm418_vm2, %v415_v8, %v417_v17  ;;  %v420_v23 = vsel %vm418_vm2, %v417_v17, %v415_v8  ;;  %v1388_v17 = vld [vmem:[#allocation6] ss:$8 sm:$0x3] }
  0xbd   : > { %v426_v24 = vmul.f32 %v422_v13, %v419_v22  ;;  %v427_v25 = vmul.f32 %v423_v14, %v420_v23  ;;  %v410_v32 = vmul.f32 %v406_v18, %v403_v20  ;;  %v411_v33 = vmul.f32 %v407_v19, %v404_v21  ;;  %v292_v20 = vpop.permute.xlu2 %291 }
  0xbe   : > { %v301_v21 = vperm.slane %v1388_v17, 0  ;;  %v302_v22 = vperm.slane %v1388_v17, 1 }
  0xbf   : > { %460 = vmatpush.msra.mxu0 %v426_v24  ;;  %480 = vmatpush.msra.mxu1 %v427_v25 }
  0xc1   : > { %461 = vmatpush.msra.mxu0 %v410_v32  ;;  %481 = vmatpush.msra.mxu1 %v411_v33  ;;  %v430_v32 = vld [vmem:[#allocation8] sm:$0xff] }
  0xc3   : > { %v369_v41 = vpop.permute.xlu1 %368  ;;  %v367_v42 = vpop.permute.xlu0 %366  ;;  %462 = vmatpush.msra.mxu0 %v394_v37  ;;  %482 = vmatpush.msra.mxu1 %v395_v38 }
  0xc4   : > { %v371_v43 = vsel %vm370_vm4, %v367_v42, %v369_v41  ;;  %v372_v44 = vsel %vm370_vm4, %v369_v41, %v367_v42 }
  0xc5   : > { %v378_v45 = vmul.f32 %v374_v35, %v371_v43  ;;  %v379_v46 = vmul.f32 %v375_v36, %v372_v44 }
  0xc7   : > { %463 = vmatpush.msra.mxu0 %v378_v45  ;;  %483 = vmatpush.msra.mxu1 %v379_v46 }
  0xc9   : > { %464 = vmatpush.msra.mxu0 %v362_v47  ;;  %484 = vmatpush.msra.mxu1 %v363_v48 }
  0xcb   : > { %v326_v56 = vpop.permute.xlu1 %325  ;;  %v344_v57 = vpop.permute.xlu0 %343 }
  0xcc   : > { %v346_v58 = vsel %vm345_vm5, %v342_v34, %v344_v57  ;;  %v347_v59 = vsel %vm345_vm5, %v344_v57, %v342_v34  ;;  %v330_v60 = vsel %vm329_vm6, %v326_v56, %v328_v53  ;;  %v331_v61 = vsel %vm329_vm6, %v328_v53, %v326_v56 }
  0xcd   : > { %v353_v62 = vmul.f32 %v349_v51, %v347_v59  ;;  %v354_v63 = vmul.f32 %v350_v52, %v346_v58  ;;  %v337_v0 = vmul.f32 %v333_v54, %v331_v61  ;;  %v338_v1 = vmul.f32 %v334_v55, %v330_v60 }
  0xcf   : > { %465 = vmatpush.msra.mxu0 %v353_v62  ;;  %485 = vmatpush.msra.mxu1 %v354_v63 }
  0xd1   : > { %466 = vmatpush.msra.mxu0 %v337_v0  ;;  %486 = vmatpush.msra.mxu1 %v338_v1 }
  0xd3   : > { %v312_v5 = vpop.permute.xlu1 %311  ;;  %v310_v6 = vpop.permute.xlu0 %309 }
  0xd4   : > { %v314_v7 = vsel %vm313_vm7, %v310_v6, %v312_v5  ;;  %v315_v8 = vsel %vm313_vm7, %v312_v5, %v310_v6 }
  0xd5   : > { %v321_v11 = vmul.f32 %v317_v3, %v315_v8  ;;  %v322_v16 = vmul.f32 %v318_v4, %v314_v7 }
  0xd7   : > { %467 = vmatpush.msra.mxu0 %v321_v11  ;;  %487 = vmatpush.msra.mxu1 %v322_v16 }
  0xdb   : > { %v294_v23 = vpop.permute.xlu0 %293 }
  0xdc   : > { %v298_v24 = vsel %vm297_vm8, %v292_v20, %v294_v23  ;;  %v299_v25 = vsel %vm297_vm8, %v294_v23, %v292_v20 }
  0xdd   : > { %v305_v29 = vmul.f32 %v301_v21, %v299_v25  ;;  %v306_v30 = vmul.f32 %v302_v22, %v298_v24 }
  0xdf   : > { %468 = vmatpush.msra.mxu0 %v305_v29  ;;  %488 = vmatpush.msra.mxu1 %v306_v30 }
  0xe0   : > { %786 = vmatmul.msk.f32.vlgmr.msra.gmra.mxu0 %vm449_vm9, %v430_v32  ;;  %787 = vmatmul.msk.f32.vlgmr.msra.gmra.mxu1 %vm449_vm9, %v430_v32 }
 0x15d   : > { %v470_v33 = vpop.f32.mrf.mxu0  ;;  %v490_v34 = vpop.f32.mrf.mxu1 }
 0x15e   : > { %569 = vrot.lane.b32.xlu2 %v490_v34, %s1093_s26  ;;  %557 = vrot.lane.b32.xlu0 %v470_v33, %s1092_s23  ;;  %v533_v15 = vmul.f32 %v470_v33, %v358_v39 }
 0x15f   : > { %567 = vrot.lane.b32.xlu1 %v470_v33, %s1093_s26  ;;  %s1025_s26 = scalar_lea.hbm %s1024_s22, 32 }
 0x160   : > { %p1026_p1 = scmp.ne.s32.totalorder %s1024_s22, %s1025_s26 }
 0x162   : > { %p1027_p3 = pnand %p1026_p1, %p1202_p13 }
 0x164   : > { %p1028_p5 = pneg %p1027_p3 }
 0x166   : > { %547 = vrot.lane.b32.xlu2 %v470_v33, %s1094_s9  ;;  %549 = vrot.lane.b32.xlu0 %v490_v34, %s1094_s9 }
 0x167   : > { %559 = vrot.lane.b32.xlu1 %v490_v34, %s1092_s23  ;;  %s654_s23 = scalar_lea.sflag [#allocation5], %s1233_s28 }
 0x16e   : > { %539 = vrot.lane.b32.xlu2 %v490_v34, %s1095_s11  ;;  %523 = vrot.lane.b32.xlu0 %v470_v33, %s1096_s12 }
 0x16f   : > { %537 = vrot.lane.b32.xlu1 %v470_v33, %s1095_s11 }
 0x176   : > { %513 = vrot.lane.b32.xlu2 %v470_v33, %s1097_s13  ;;  %515 = vrot.lane.b32.xlu0 %v490_v34, %s1097_s13 }
 0x177   : > { %525 = vrot.lane.b32.xlu1 %v490_v34, %s1096_s12  ;;  %s1029_s12 = scalar_lea.hbm %s1530_s4, 64 }
 0x178   : > { %p1031_p8 = scmp.lt.s32.totalorder %s1029_s12, %s1025_s26 }
 0x17a   : > { %p1032_p7 = por %p1031_p8, %p1030_p12 }
 0x17c   : > { %p1033_p9 = pnand %p1032_p7, %p1028_p5 }
 0x17e   : > { %505 = vrot.lane.b32.xlu2 %v490_v34, %s1098_s14  ;;  %493 = vrot.lane.b32.xlu0 %v470_v33, %s1099_s19 }
 0x17f   : > { %503 = vrot.lane.b32.xlu1 %v470_v33, %s1098_s14 }
 0x187   : > { %495 = vrot.lane.b32.xlu1 %v490_v34, %s1099_s19 }
 0x1b8   : > { %v570_v37 = vpop.permute.xlu2 %569 }
 0x1c0   : > { %v548_v44 = vpop.permute.xlu2 %547 }
 0x1d0   : > { %v558_v38 = vpop.permute.xlu0 %557 }
 0x1d1   : > { %v568_v41 = vpop.permute.xlu1 %567 }
 0x1d2   : > { %v571_v42 = vsel %vm418_vm2, %v568_v41, %v570_v37  ;;  %v572_v43 = vsel %vm418_vm2, %v570_v37, %v568_v41 }
 0x1d3   : > { %v573_v45 = vmul.f32 %v571_v42, %v422_v13  ;;  %v574_v46 = vmul.f32 %v572_v43, %v423_v14  ;;  %v540_v14 = vpop.permute.xlu2 %539 }
 0x1d5   : > { %610 = vmatpush.msra.mxu2 %v573_v45  ;;  %633 = vmatpush.msra.mxu3 %v574_v46 }
 0x1d8   : > { %v550_v47 = vpop.permute.xlu0 %549 }
 0x1d9   : > { %v560_v48 = vpop.permute.xlu1 %559  ;;  %v551_v53 = vsel %vm386_vm3, %v548_v44, %v550_v47  ;;  %v552_v56 = vsel %vm386_vm3, %v550_v47, %v548_v44 }
 0x1da   : > { %v561_v57 = vsel %vm402_vm1, %v558_v38, %v560_v48  ;;  %v562_v58 = vsel %vm402_vm1, %v560_v48, %v558_v38  ;;  %v553_v59 = vmul.f32 %v551_v53, %v390_v26  ;;  %v554_v60 = vmul.f32 %v552_v56, %v391_v27 }
 0x1db   : > { %v563_v10 = vmul.f32 %v561_v57, %v406_v18  ;;  %v564_v13 = vmul.f32 %v562_v58, %v407_v19  ;;  %v534_v26 = vmul.f32 %v490_v34, %v359_v40  ;;  %v514_v27 = vpop.permute.xlu2 %513 }
 0x1dd   : > { %611 = vmatpush.msra.mxu2 %v563_v10  ;;  %634 = vmatpush.msra.mxu3 %v564_v13 }
 0x1df   : > { %612 = vmatpush.msra.mxu2 %v553_v59  ;;  %635 = vmatpush.msra.mxu3 %v554_v60 }
 0x1e0   : > { %v524_v61 = vpop.permute.xlu0 %523 }
 0x1e1   : > { %v538_v62 = vpop.permute.xlu1 %537 }
 0x1e2   : > { %v541_v63 = vsel %vm370_vm4, %v538_v62, %v540_v14  ;;  %v542_v12 = vsel %vm370_vm4, %v540_v14, %v538_v62 }
 0x1e3   : > { %v543_v18 = vmul.f32 %v541_v63, %v374_v35  ;;  %v544_v19 = vmul.f32 %v542_v12, %v375_v36  ;;  %v506_v7 = vpop.permute.xlu2 %505 }
 0x1e5   : > { %613 = vmatpush.msra.mxu2 %v543_v18  ;;  %636 = vmatpush.msra.mxu3 %v544_v19 }
 0x1e7   : > { %614 = vmatpush.msra.mxu2 %v533_v15  ;;  %637 = vmatpush.msra.mxu3 %v534_v26 }
 0x1e8   : > { %v516_v0 = vpop.permute.xlu0 %515 }
 0x1e9   : > { %v526_v1 = vpop.permute.xlu1 %525  ;;  %v517_v5 = vsel %vm329_vm6, %v514_v27, %v516_v0  ;;  %v518_v28 = vsel %vm329_vm6, %v516_v0, %v514_v27 }
 0x1ea   : > { %v527_v35 = vsel %vm345_vm5, %v524_v61, %v526_v1  ;;  %v528_v36 = vsel %vm345_vm5, %v526_v1, %v524_v61  ;;  %v519_v40 = vmul.f32 %v518_v28, %v333_v54  ;;  %v520_v6 = vmul.f32 %v517_v5, %v334_v55 }
 0x1eb   : > { %v529_v31 = vmul.f32 %v528_v36, %v349_v51  ;;  %v530_v39 = vmul.f32 %v527_v35, %v350_v52 }
 0x1ed   : > { %615 = vmatpush.msra.mxu2 %v529_v31  ;;  %638 = vmatpush.msra.mxu3 %v530_v39 }
 0x1ef   : > { %616 = vmatpush.msra.mxu2 %v519_v40  ;;  %639 = vmatpush.msra.mxu3 %v520_v6 }
 0x1f0   : > { %v494_v50 = vpop.permute.xlu0 %493 }
 0x1f1   : > { %v504_v8 = vpop.permute.xlu1 %503 }
 0x1f2   : > { %v507_v11 = vsel %vm313_vm7, %v504_v8, %v506_v7  ;;  %v508_v51 = vsel %vm313_vm7, %v506_v7, %v504_v8 }
 0x1f3   : > { %v509_v49 = vmul.f32 %v508_v51, %v317_v3  ;;  %v510_v52 = vmul.f32 %v507_v11, %v318_v4  ;;  %v578_v4 = vld [vmem:[#allocation9 + $0x8] sm:$0xff] }
 0x1f5   : > { %617 = vmatpush.msra.mxu2 %v509_v49  ;;  %640 = vmatpush.msra.mxu3 %v510_v52 }
 0x1f9   : > { %v496_v54 = vpop.permute.xlu1 %495 }
 0x1fa   : > { %v497_v55 = vsel %vm297_vm8, %v494_v50, %v496_v54  ;;  %v498_v16 = vsel %vm297_vm8, %v496_v54, %v494_v50 }
 0x1fb   : > { %v499_v20 = vmul.f32 %v498_v16, %v301_v21  ;;  %v500_v3 = vmul.f32 %v497_v55, %v302_v22 }
 0x1fd   : > { %618 = vmatpush.msra.mxu2 %v499_v20  ;;  %641 = vmatpush.msra.mxu3 %v500_v3 }
 0x1fe   : > { %788 = vmatmul.msk.f32.vlgmr.msra.gmra.mxu2 %vm449_vm9, %v577_v2  ;;  %790 = vmatmul.msk.f32.vlgmr.msra.gmra.mxu3 %vm449_vm9, %v577_v2 }
 0x206   : > { %789 = vmatmul.msk.f32.gmra.mxu2 %vm449_vm9, %v578_v4  ;;  %791 = vmatmul.msk.f32.gmra.mxu3 %vm449_vm9, %v578_v4 }
 0x281   : > { %v620_v9 = vpop.f32.mrf.mxu2  ;;  %v643_v21 = vpop.f32.mrf.mxu3 }
 0x282   : > { %649 = vst [vmem:[%s263_s30] sm:$0xff] %v620_v9 }
 0x283   : > { %650 = vst [vmem:[%s263_s30 + $0x8] sm:$0xff] %v643_v21 }
 0x289   : > { %v623_v17 = vpop.f32.mrf.mxu2  ;;  %v646_v22 = vpop.f32.mrf.mxu3 }
 0x28a   : > { %651 = vst [vmem:[%s263_s30 + $0x10] sm:$0xff] %v623_v17 }
 0x28b   : > { %652 = vst [vmem:[%s263_s30 + $0x18] sm:$0xff] %v646_v22 }
 0x28c   : > { %1036 = shalt.err (!%p1033_p9)
}
 0x28d   : > { %s1100_s28 = smov 256  }
 0x28e   : > { %813 = dma.vmem_to_hbm [thread:$0]  (%p1202_p13), %s667_s8, 512, %s669_s10, %s654_s23, %s1100_s28, %s1100_s28, %s1098_s14  }
 0x28f PF: > { %s683_s21 = sand.u32 1, %s1071_s15   ;;  %p1537_p10 = scmp.ge.s32.totalorder %s1083_s18, 2 }
 0x290   : > { %s684_s24 = scalar_lea.sflag [#allocation5], %s683_s21 }
 0x291   : > { %p830_p11 = pnand %p1537_p10, %p1207_p4 }
 0x293   : > { %p831_p0 = pneg %p830_p11 }
 0x295   : > { %1066 = dma.done.wait (%p831_p0), %s684_s24, 512  }
 0x296   : > { %1068 = vsyncadd (%p831_p0), %s684_s24, 4294966784  ;;  %p19_p2 = scmp.ge.s32.totalorder %s1182_s20, 4   ;;  %s1538_s15 = smov %s1075_s16 }
 0x297   : > { %s1539_s16 = smov %s1079_s17  ;;  %s1540_s17 = smov %s1194_s25 }
 0x298   : > { %s1541_s18 = smov %s1182_s20  ;;  %21 = sbr.rel (!%p19_p2) target bundleno = 7 (0x7), region = 101 }
 0x29d   :  { %690 = vsyncpa [#allocation4], 1 }
 0x29e   :  { %692 = vsyncpa [#allocation4 + $0x1], 1 }
 0x29f   :  { %693 = vsyncpa [#allocation7], 1 }
 0x2a0   :  { %694 = vsyncpa [#allocation10], 1 }
 0x2a1   :  { %695 = vsyncpa [#allocation5], 1 }
 0x2a2   :  { %697 = vsyncpa [#allocation5 + $0x1], 1 }

</bundles_post_ra>
